<compile_context>
chip_gen: v5e
topology: v5e:2x2
jax: 0.10.0
libtpu: 0.0.40
codegen_flags: <defaults>
</compile_context>

<pallas_src>
import jax
import jax.numpy as jnp
import numpy as np
from jax.experimental import pallas as pl
from jax.experimental.pallas import tpu as pltpu


def _make_mlp_kernel(num_layers, scalar_last_bias):
    """Fused kernel for `num_layers` Linear layers, ReLU between all but the last.

    Ref order: x_ref, w0, b0, w1, b1, ..., w_{L-1}, b_{L-1}, o_ref.
    Layout: x is (in_dim, TB); weights are PyTorch-layout (out_features, in_features);
    biases are (out_features, 1) in VMEM, except the final bias which is a (1, 1)
    SMEM scalar when output_dim == 1.
    """

    def kernel(x_ref, *refs):
        o_ref = refs[-1]
        p_refs = refs[:-1]
        h = x_ref[...]                                   # (in_dim, TB), bf16
        for layer in range(num_layers):
            w_ref = p_refs[2 * layer]
            b_ref = p_refs[2 * layer + 1]
            acc = jnp.dot(w_ref[...], h, preferred_element_type=jnp.float32)
            if layer == num_layers - 1 and scalar_last_bias:
                acc = acc + b_ref[0, 0]                  # SMEM scalar broadcast
            else:
                acc = acc + b_ref[...]                   # (out, 1) broadcast over lanes
            if layer < num_layers - 1:
                acc = jnp.maximum(acc, 0.0)              # ReLU in f32 on the VPU
                h = acc.astype(x_ref.dtype)              # bf16 operand for next MXU op
            else:
                o_ref[...] = acc.astype(o_ref.dtype)

    return kernel


def mlp_forward(x, params, *, block_batch=1024, compute_dtype=jnp.bfloat16):
    """Forward pass of MLPNetwork.

    x:      (batch, input_dim) float array.
    params: tuple of (w, b) per layer; w: (out_features, in_features) (PyTorch layout),
            b: (out_features,).
    Returns (batch, output_dim) float32.
    """
    batch, input_dim = x.shape
    num_layers = len(params)
    out_dim = params[-1][0].shape[0]
    scalar_last_bias = out_dim == 1

    # Batch tile: full batch if it fits in one tile, else a 128-aligned tile so the
    # lane (last) dim of every block stays dense.
    if batch <= block_batch:
        tb = batch
    else:
        tb = max(128, (block_batch // 128) * 128)
    grid = (pl.cdiv(batch, tb),)

    # Feature-major layout: batch on the lane dimension. (Wrapper-side transpose is
    # layout plumbing; the kernel then sees dense MXU N dims and lane-dense stores.)
    x_t = x.T.astype(compute_dtype)                      # (input_dim, batch)

    in_specs = [pl.BlockSpec((input_dim, tb), lambda i: (0, i))]
    operands = [x_t]
    flops = 0
    for li, (w, b) in enumerate(params):
        fan_out, fan_in = w.shape
        flops += 2 * batch * fan_in * fan_out
        # Constant index_map -> weight stays VMEM-resident across grid steps.
        in_specs.append(pl.BlockSpec(tuple(w.shape), lambda i: (0, 0)))
        operands.append(w.astype(compute_dtype))
        if li == num_layers - 1 and scalar_last_bias:
            in_specs.append(pl.BlockSpec(memory_space=pltpu.MemorySpace.SMEM))
            operands.append(b.reshape(1, 1).astype(jnp.float32))
        else:
            in_specs.append(pl.BlockSpec((fan_out, 1), lambda i: (0, 0)))
            operands.append(b.reshape(fan_out, 1).astype(jnp.float32))

    out_specs = pl.BlockSpec((out_dim, tb), lambda i: (0, i))
    out_shape = jax.ShapeDtypeStruct((out_dim, batch), jnp.float32)

    bytes_accessed = sum(int(np.prod(o.shape)) * o.dtype.itemsize for o in operands)
    bytes_accessed += batch * out_dim * 4

    kernel = _make_mlp_kernel(num_layers, scalar_last_bias)
    out_t = pl.pallas_call(
        kernel,
        out_shape=out_shape,
        grid=grid,
        in_specs=in_specs,
        out_specs=out_specs,
        compiler_params=pltpu.CompilerParams(
            dimension_semantics=("parallel",)),
        cost_estimate=pl.CostEstimate(
            flops=flops, transcendentals=0, bytes_accessed=bytes_accessed),
    )(*operands)

    return out_t.T                                       # (batch, output_dim), f32


def init_params(key, input_dim, hidden_dim, num_hidden_layers, output_dim):
    """PyTorch nn.Linear-style init: W (out, in), b (out,), U(-1/sqrt(fan_in), +)."""
    dims = [(input_dim, hidden_dim)]
    dims += [(hidden_dim, hidden_dim) for _ in range(1, num_hidden_layers)]
    dims += [(hidden_dim, output_dim)]
    params = []
    for fan_in, fan_out in dims:
        key, kw, kb = jax.random.split(key, 3)
        bound = 1.0 / np.sqrt(fan_in)
        w = jax.random.uniform(kw, (fan_out, fan_in), jnp.float32, -bound, bound)
        b = jax.random.uniform(kb, (fan_out,), jnp.float32, -bound, bound)
        params.append((w, b))
    return tuple(params)


def mlp_reference(x, params, compute_dtype=jnp.bfloat16):
    """Pure-JAX reference mirroring the kernel's bf16 operands / f32 accumulation."""
    num_layers = len(params)
    h = x.astype(compute_dtype)
    out = None
    for li, (w, b) in enumerate(params):
        acc = jnp.dot(h, w.astype(compute_dtype).T,
                      preferred_element_type=jnp.float32) + b.astype(jnp.float32)
        if li < num_layers - 1:
            h = jnp.maximum(acc, 0.0).astype(compute_dtype)
        else:
            out = acc
    return out


if __name__ == "__main__":
    # Small shapes consistent with the module config.
    batch, input_dim, hidden_dim, num_hidden_layers, output_dim = 256, 16, 32, 2, 1

    key = jax.random.PRNGKey(0)
    key, kx = jax.random.split(key)
    x = jax.random.normal(kx, (batch, input_dim), jnp.float32)
    params = init_params(key, input_dim, hidden_dim, num_hidden_layers, output_dim)

    # block_batch=128 exercises the batch grid (grid=(2,)) at this small size;
    # production-sized batches would use the default 1024-row tiles.
    # TODO(synk): dropout=0 and use_spectral_norm=False are eval no-ops here; a
    # nonzero-dropout / spectral-norm variant is not implemented.
    out = mlp_forward(x, params, block_batch=128)
    out = jax.block_until_ready(out)

    ref = mlp_reference(x, params)
    np.testing.assert_allclose(np.asarray(out), np.asarray(ref), rtol=2e-2, atol=2e-2)

    print("KERNEL_OK")
</pallas_src>

<mosaic_0001>
module attributes {stable_mosaic.version = 11 : i64} {
  func.func @kernel(%arg0: i32, %arg1: memref<16x128xbf16, #tpu.memory_space<vmem>>, %arg2: memref<32x16xbf16, #tpu.memory_space<vmem>>, %arg3: memref<32x1xf32, #tpu.memory_space<vmem>>, %arg4: memref<32x32xbf16, #tpu.memory_space<vmem>>, %arg5: memref<32x1xf32, #tpu.memory_space<vmem>>, %arg6: memref<1x32xbf16, #tpu.memory_space<vmem>>, %arg7: memref<1x1xf32, #tpu.memory_space<smem>>, %arg8: memref<1x128xf32, #tpu.memory_space<vmem>>) attributes {dimension_semantics = [#tpu.dimension_semantics<parallel>], iteration_bounds = array<i64: 2>, scalar_prefetch = 0 : i64, scratch_operands = 0 : i64, tpu.core_type = #tpu.core_type<tc>, window_params = [{transform_indices = @transform_0, window_bounds = array<i64: 16, 128>}, {pipeline_mode = #tpu.pipeline_mode<synchronous>, transform_indices = @transform_1, window_bounds = array<i64: 32, 16>}, {pipeline_mode = #tpu.pipeline_mode<synchronous>, transform_indices = @transform_2, window_bounds = array<i64: 32, 1>}, {pipeline_mode = #tpu.pipeline_mode<synchronous>, transform_indices = @transform_3, window_bounds = array<i64: 32, 32>}, {pipeline_mode = #tpu.pipeline_mode<synchronous>, transform_indices = @transform_4, window_bounds = array<i64: 32, 1>}, {pipeline_mode = #tpu.pipeline_mode<synchronous>, transform_indices = @transform_5, window_bounds = array<i64: 1, 32>}, {transform_indices = @transform_6, window_bounds = array<i64: 1, 1>}, {transform_indices = @transform_7, window_bounds = array<i64: 1, 128>}]} {
    %c0 = arith.constant 0 : index
    %c0_0 = arith.constant 0 : index
    %0 = vector.load %arg1[%c0, %c0_0] : memref<16x128xbf16, #tpu.memory_space<vmem>>, vector<16x128xbf16>
    %c0_1 = arith.constant 0 : index
    %c0_2 = arith.constant 0 : index
    %1 = vector.load %arg2[%c0_1, %c0_2] : memref<32x16xbf16, #tpu.memory_space<vmem>>, vector<32x16xbf16>
    %cst = arith.constant dense<0.000000e+00> : vector<32x128xf32>
    %2 = tpu.matmul %1, %0, %cst {dimension_numbers = #tpu.dot_dimension_numbers<[1], [0], [0], [1], [0, 0, 1, 1], [], []>} : vector<32x16xbf16>, vector<16x128xbf16>, vector<32x128xf32> -> vector<32x128xf32>
    %c0_3 = arith.constant 0 : index
    %c0_4 = arith.constant 0 : index
    %3 = vector.load %arg3[%c0_3, %c0_4] : memref<32x1xf32, #tpu.memory_space<vmem>>, vector<32x1xf32>
    %4 = vector.broadcast %3 : vector<32x1xf32> to vector<32x128xf32>
    %5 = arith.addf %2, %4 : vector<32x128xf32>
    %cst_5 = arith.constant 0.000000e+00 : f32
    %6 = vector.broadcast %cst_5 : f32 to vector<32x128xf32>
    %7 = arith.maximumf %5, %6 : vector<32x128xf32>
    %8 = arith.truncf %7 : vector<32x128xf32> to vector<32x128xbf16>
    %c0_6 = arith.constant 0 : index
    %c0_7 = arith.constant 0 : index
    %9 = vector.load %arg4[%c0_6, %c0_7] : memref<32x32xbf16, #tpu.memory_space<vmem>>, vector<32x32xbf16>
    %cst_8 = arith.constant dense<0.000000e+00> : vector<32x128xf32>
    %10 = tpu.matmul %9, %8, %cst_8 {dimension_numbers = #tpu.dot_dimension_numbers<[1], [0], [0], [1], [0, 0, 1, 1], [], []>} : vector<32x32xbf16>, vector<32x128xbf16>, vector<32x128xf32> -> vector<32x128xf32>
    %c0_9 = arith.constant 0 : index
    %c0_10 = arith.constant 0 : index
    %11 = vector.load %arg5[%c0_9, %c0_10] : memref<32x1xf32, #tpu.memory_space<vmem>>, vector<32x1xf32>
    %12 = vector.broadcast %11 : vector<32x1xf32> to vector<32x128xf32>
    %13 = arith.addf %10, %12 : vector<32x128xf32>
    %cst_11 = arith.constant 0.000000e+00 : f32
    %14 = vector.broadcast %cst_11 : f32 to vector<32x128xf32>
    %15 = arith.maximumf %13, %14 : vector<32x128xf32>
    %16 = arith.truncf %15 : vector<32x128xf32> to vector<32x128xbf16>
    %c0_12 = arith.constant 0 : index
    %c0_13 = arith.constant 0 : index
    %17 = vector.load %arg6[%c0_12, %c0_13] : memref<1x32xbf16, #tpu.memory_space<vmem>>, vector<1x32xbf16>
    %cst_14 = arith.constant dense<0.000000e+00> : vector<1x128xf32>
    %18 = tpu.matmul %17, %16, %cst_14 {dimension_numbers = #tpu.dot_dimension_numbers<[1], [0], [0], [1], [0, 0, 1, 1], [], []>} : vector<1x32xbf16>, vector<32x128xbf16>, vector<1x128xf32> -> vector<1x128xf32>
    %c0_15 = arith.constant 0 : index
    %c0_16 = arith.constant 0 : index
    %19 = memref.load %arg7[%c0_15, %c0_16] : memref<1x1xf32, #tpu.memory_space<smem>>
    %20 = vector.broadcast %19 : f32 to vector<1x128xf32>
    %21 = arith.addf %18, %20 : vector<1x128xf32>
    %c0_17 = arith.constant 0 : index
    %c0_18 = arith.constant 0 : index
    %22 = vector.load %arg8[%c0_17, %c0_18] : memref<1x128xf32, #tpu.memory_space<vmem>>, vector<1x128xf32>
    tpu.vector_store %arg8[%c0_17, %c0_18], %21 {strides = array<i32>} : memref<1x128xf32, #tpu.memory_space<vmem>>, vector<1x128xf32>,
    return
  }
  func.func @transform_0(%arg0: i32) -> (i32, i32) {
    %c0_i32 = arith.constant 0 : i32
    %c0_i32_0 = arith.constant 0 : i32
    return %c0_i32, %arg0 : i32, i32
  }
  func.func @transform_1(%arg0: i32) -> (i32, i32) {
    %c0_i32 = arith.constant 0 : i32
    %c0_i32_0 = arith.constant 0 : i32
    %c0_i32_1 = arith.constant 0 : i32
    return %c0_i32, %c0_i32_0 : i32, i32
  }
  func.func @transform_2(%arg0: i32) -> (i32, i32) {
    %c0_i32 = arith.constant 0 : i32
    %c0_i32_0 = arith.constant 0 : i32
    %c0_i32_1 = arith.constant 0 : i32
    return %c0_i32, %c0_i32_0 : i32, i32
  }
  func.func @transform_3(%arg0: i32) -> (i32, i32) {
    %c0_i32 = arith.constant 0 : i32
    %c0_i32_0 = arith.constant 0 : i32
    %c0_i32_1 = arith.constant 0 : i32
    return %c0_i32, %c0_i32_0 : i32, i32
  }
  func.func @transform_4(%arg0: i32) -> (i32, i32) {
    %c0_i32 = arith.constant 0 : i32
    %c0_i32_0 = arith.constant 0 : i32
    %c0_i32_1 = arith.constant 0 : i32
    return %c0_i32, %c0_i32_0 : i32, i32
  }
  func.func @transform_5(%arg0: i32) -> (i32, i32) {
    %c0_i32 = arith.constant 0 : i32
    %c0_i32_0 = arith.constant 0 : i32
    %c0_i32_1 = arith.constant 0 : i32
    return %c0_i32, %c0_i32_0 : i32, i32
  }
  func.func @transform_6(%arg0: i32) -> (i32, i32) {
    %c0_i32 = arith.constant 0 : i32
    %c0_i32_0 = arith.constant 0 : i32
    %c0_i32_1 = arith.constant 0 : i32
    return %c0_i32, %c0_i32_0 : i32, i32
  }
  func.func @transform_7(%arg0: i32) -> (i32, i32) {
    %c0_i32 = arith.constant 0 : i32
    %c0_i32_0 = arith.constant 0 : i32
    return %c0_i32, %arg0 : i32, i32
  }
}

</mosaic_0001>

<bundles_post_ra>
// kernel: tpu_custom_call.1
= control target key start
LH: loop header
LB: loop body
LE: loop exit
PB: predicated region body
PF: predicated region fallthrough
CT: control target
= control target key end

     0   :  { %s896_s0 = inlined_call_operand.vmem [shape: bf16[16,256], index: 0, kind: input, shape index: {}]   ;;  %s897_s1 = inlined_call_operand.vmem [shape: bf16[32,16], index: 1, kind: input, shape index: {}]   ;;  %s898_s2 = inlined_call_operand.vmem [shape: f32[32,1], index: 2, kind: input, shape index: {}]   ;;  %s899_s3 = inlined_call_operand.vmem [shape: bf16[32,32], index: 3, kind: input, shape index: {}]   ;;  %s900_s4 = inlined_call_operand.vmem [shape: f32[32,1], index: 4, kind: input, shape index: {}]   ;;  %s901_s5 = inlined_call_operand.vmem [shape: bf16[1,32], index: 5, kind: input, shape index: {}]   ;;  %s902_s6 = inlined_call_operand.<no memory space> [shape: f32[1,1], index: 6, kind: input, shape index: {}]   ;;  %s903_s7 = inlined_call_operand.hbm [shape: f32[1,256], index: 7, kind: output, shape index: {}]  }
   0x1   :  { %12 = sst [smem:[#allocation2]] %s902_s6 }
   0x2   :  { %13 = vsyncpa [#allocation5], 0 }
   0x3   :  { %15 = vsyncpa [#allocation5 + $0x1], 0  ;;  %s759_s26 = smov 0   ;;  %s761_s27 = smov 0  }
   0x4   :  { %s763_s28 = smov 0   ;;  %s765_s29 = smov 0  }
   0x5 LB: > { %s566_s6 = sadd.s32 4294967295, %s713_s29   ;;  %s567_s30 = sadd.s32 4294967294, %s713_s29   ;;  %s713_s29 = sphi %s765_s29, %s909_s29   ;;  %s709_s28 = sphi %s763_s28, %s908_s28   ;;  %s705_s27 = sphi %s761_s27, %s907_s27   ;;  %s701_s26 = sphi %s759_s26, %s906_s26  }
   0x6   : > { %s782_s8 = sadd.s32 1, %s713_s29   ;;  %s28_s9 = sadd.s32 1, %s709_s28 }
   0x7   : > { %s25_s10 = ssub.s32 %s713_s29, %s782_s8  ;;  %p35_p0 = scmp.ne.s32.totalorder %s709_s28, %s705_s27 }
   0x8   : > { %p26_p1 = scmp.eq.s32.totalorder %s25_s10, 0  ;;  %p36_p2 = scmp.eq.s32.totalorder %s713_s29, 0 }
   0x9   : > { %p191_p3 = scmp.eq.s32.totalorder %s566_s6, 1  ;;  %p196_p4 = scmp.ne.s32.totalorder %s705_s27, %s701_s26 }
   0xa   : > { %s795_s11 = scalar_select %p26_p1, %s709_s28, %s28_s9  }
   0xb   : > { %p37_p5 = por %p36_p2, %p35_p0  ;;  %p797_p6 = por %p191_p3, %p35_p0 }
   0xc   : > { %p197_p7 = scmp.eq.s32.totalorder %s567_s30, 1  ;;  %p569_p9 = scmp.ge.s32.totalorder %s713_s29, 2 }
   0xe   : > { %p801_p8 = por %p197_p7, %p196_p4  ;;  %231 = sbr.rel (%p569_p9) target bundleno = 25 (0x19), region = 40 }
  0x13   : > { %234 = sbr.rel (!%p37_p5) target bundleno = 25 (0x19), region = 44  ;;  %s236_s14 = sand.u32 (%p37_p5), 1, %s709_s28  }
  0x14   : > { %s571_s15 = sshll.u32 (%p37_p5), %s713_s29, 2  ;;  %s570_s16 = sshll.u32 (%p37_p5), %s236_s14, 3 }
  0x15   : > { %s240_s19 = scalar_lea.vmem (%p37_p5), %s896_s0, %s571_s15  ;;  %s238_s20 = scalar_lea.vmem (%p37_p5), [#allocation3], %s570_s16 }
  0x16   : > { %v257_v0 = vld [vmem:[%s240_s19] sm:$0xf] (%p37_p5)  ;;  %v259_v1 = vld [vmem:[%s240_s19 + $0x8] sm:$0xf] (%p37_p5) }
  0x17   : > { %258 = vst [vmem:[%s238_s20] sm:$0xf] (%p37_p5), %v257_v0 }
  0x18   : > { %260 = vst [vmem:[%s238_s20 + $0x4] sm:$0xf] %v259_v1 }
  0x19 PF: > { %p572_p10 = scmp.ge.s32.totalorder %s713_s29, 1  ;;  %p287_p11 = scmp.lt.s32.totalorder %s713_s29, 3 }
  0x1b   : > { %p288_p12 = pnand %p572_p10, %p287_p11 }
  0x1c   : > { %s816_s21 = sand.u32 (!%p288_p12), 1, %s705_s27   ;;  %s474_s22 = sld [smem:[#allocation2]] (!%p288_p12) }
  0x1d   : > { %291 = sbr.rel (%p288_p12) target bundleno = 496 (0x1f0), region = 85  ;;  %s573_s30 = sshll.u32 (!%p288_p12), %s816_s21, 3 }
  0x1e   : > { %s296_s9 = scalar_lea.vmem (!%p288_p12), [#allocation3], %s573_s30  ;;  %s502_s25 = scalar_lea.hbm (!%p288_p12), %s903_s7, %s566_s6 }
  0x1f   : > { %s323_s30 = scalar_lea.vmem (!%p288_p12), [#allocation4], %s816_s21  ;;  %s506_s10 = sshll.u32 (!%p288_p12), %s502_s25, 4  ;;  %s507_s10 = int_to_ptr.hbm [resolvable:$true] %s506_s10 }
  0x20   : > { %s494_s14 = scalar_lea.sflag (!%p288_p12), [#allocation5], %s816_s21  ;;  %s665_s15 = sshra.s32 (!%p288_p12), %s507_s10, 4  ;;  %s666_s15 = int_to_ptr.hbm [resolvable:$true] %s665_s15 }
  0x21   : > { %s667_s16 = scalar_lea.hbm (!%p288_p12), %s666_s15, 1  ;;  %s671_s6 = scalar_lea.hbm (!%p288_p12), %s903_s7, 2 }
  0x22   : > { %v333_v2 = vld [vmem:[%s898_s2 + $0x10] sm:$0xff]  ;;  %v331_v3 = vld [vmem:[%s898_s2] sm:$0xff]  ;;  %v715_v4 = vmov 0   ;;  %vm371_vm0 = vcmask 130048   ;;  %v334_v7 = vld [vmem:[%s898_s2 + $0x18] sm:$0xff]  ;;  %vm441_vm1 = vcmask 261120   ;;  %v475_v53 = vstv %s474_s22  ;;  %p668_p13 = scmp.ne.s32.totalorder %s666_s15, %s667_s16  ;;  %p672_p2 = scmp.lt.s32.totalorder %s666_s15, %s903_s7 }
  0x23   : > { %649 = vset.pattern.permute.xlu1 %v715_v4  ;;  %648 = vset.pattern.permute.xlu0 %v715_v4  ;;  %v601_v5 = vld [vmem:[%s296_s9] sm:$0xff]  ;;  %v409_v13 = vld [vmem:[%s900_s4 + $0x10] sm:$0xff]  ;;  %v410_v16 = vld [vmem:[%s900_s4 + $0x18] sm:$0xff]  ;;  %s504_s9 = sshll.u32 %s323_s30, 4  ;;  %p673_p3 = scmp.lt.s32.totalorder %s671_s6, %s667_s16  ;;  %s505_s9 = int_to_ptr.vmem [resolvable:$true] %s504_s9 }
  0x24   : > { %347 = vperm.xlu0 %648, %v333_v2   ;;  %337 = vperm.xlu1 %649, %v331_v3   ;;  %v602_v6 = vld [vmem:[%s897_s1] sm:$0xff]  ;;  %v332_v8 = vld [vmem:[%s898_s2 + $0x8] sm:$0xff]  ;;  %p669_p0 = pnand %p668_p13, %p797_p6 }
  0x25   : > { %650 = vset.pattern.permute.xlu2 %v715_v4  ;;  %385 = vmatpush.bf16.msra.mxu0 %v601_v5  ;;  %v407_v9 = vld [vmem:[%s900_s4] sm:$0xff]  ;;  %v408_v10 = vld [vmem:[%s900_s4 + $0x8] sm:$0xff]  ;;  %p674_p4 = por %p673_p3, %p672_p2 }
  0x26   : > { %v603_v11 = vld [vmem:[%s897_s1 + $0x8] sm:$0xff]  ;;  %423 = vperm.xlu2 %650, %v409_v13   ;;  %v604_v32 = vld [vmem:[%s899_s3] sm:$0xff]  ;;  %p670_p1 = pneg %p669_p0 }
  0x27   : > { %v605_v33 = vld [vmem:[%s899_s3 + $0x8] sm:$0xff]  ;;  %v473_v52 = vld [vmem:[%s901_s5] sm:$0x1] }
  0x28   : > { %586 = vmatmul.msk.bf16.vlgmr.msra.gmra.mxu0 %vm371_vm0, %v602_v6  ;;  %p675_p5 = pnand %p674_p4, %p670_p1 }
  0x2c   : > { %352 = vperm.xlu0 %648, %v334_v7   ;;  %342 = vperm.xlu1 %649, %v332_v8  }
  0x2e   : > { %428 = vperm.xlu2 %650, %v410_v16  }
  0x34   : > { %413 = vperm.xlu0 %648, %v407_v9   ;;  %418 = vperm.xlu1 %649, %v408_v10  }
  0x38   : > { %587 = vmatmul.msk.bf16.gmra.mxu0 %vm371_vm0, %v603_v11 }
  0x80   : > { %v424_v35 = vpop.permute.xlu2 %423 }
  0x88   : > { %v429_v40 = vpop.permute.xlu2 %428 }
  0x96   : > { %v338_v15 = vpop.permute.xlu1 %337  ;;  %v348_v17 = vpop.permute.xlu0 %347 }
  0x9e   : > { %v343_v19 = vpop.permute.xlu1 %342  ;;  %v353_v21 = vpop.permute.xlu0 %352 }
  0xa5   : > { %v387_v12 = vpop.f32.mrf.mxu0 }
  0xa6   : > { %v388_v25 = vadd.f32 %v387_v12, %v338_v15  ;;  %v419_v38 = vpop.permute.xlu1 %418  ;;  %v414_v44 = vpop.permute.xlu0 %413 }
  0xa8   : > { %v397_v30 = vmax.f32 %v388_v25, 0.0 }
  0xad   : > { %v389_v14 = vpop.f32.mrf.mxu0 }
  0xae   : > { %v390_v23 = vadd.f32 %v389_v14, %v343_v19 }
  0xb0   : > { %v398_v28 = vmax.f32 %v390_v23, 0.0 }
  0xb2   : > { %v401_v31 = vpack.c.bf16 %v398_v28, %v397_v30 }
  0xb5   : > { %v392_v18 = vpop.f32.mrf.mxu0 }
  0xb6   : > { %v393_v20 = vadd.f32 %v392_v18, %v348_v17 }
  0xb8   : > { %v399_v26 = vmax.f32 %v393_v20, 0.0 }
  0xbd   : > { %v394_v22 = vpop.f32.mrf.mxu0 }
  0xbe   : > { %v395_v24 = vadd.f32 %v394_v22, %v353_v21 }
  0xc0   : > { %v400_v27 = vmax.f32 %v395_v24, 0.0 }
  0xc2   : > { %v402_v29 = vpack.c.bf16 %v400_v27, %v399_v26 }
  0xc4   : > { %454 = vmatpush.bf16.msra.mxu1 %v402_v29  ;;  %606 = vmatpush.bf16.msra.mxu3 %v402_v29 }
  0xc8   : > { %455 = vmatpush.bf16.msra.mxu1 %v401_v31  ;;  %607 = vmatpush.bf16.msra.mxu3 %v401_v31 }
  0xcb   : > { %596 = vmatmul.msk.bf16.vlgmr.msra.gmra.mxu1 %vm441_vm1, %v604_v32  ;;  %597 = vmatmul.msk.bf16.vlgmr.msra.gmra.mxu3 %vm441_vm1, %v605_v33 }
 0x148   : > { %v457_v34 = vpop.f32.mrf.mxu1 }
 0x149   : > { %v458_v45 = vadd.f32 %v457_v34, %v414_v44 }
 0x14b   : > { %v467_v50 = vmax.f32 %v458_v45, 0.0 }
 0x14e   : > { %v462_v36 = vpop.f32.mrf.mxu3 }
 0x14f   : > { %v463_v39 = vadd.f32 %v462_v36, %v424_v35 }
 0x150   : > { %v459_v37 = vpop.f32.mrf.mxu1 }
 0x151   : > { %v460_v42 = vadd.f32 %v459_v37, %v419_v38  ;;  %v469_v46 = vmax.f32 %v463_v39, 0.0 }
 0x153   : > { %v468_v48 = vmax.f32 %v460_v42, 0.0 }
 0x155   : > { %v471_v51 = vpack.c.bf16 %v468_v48, %v467_v50 }
 0x156   : > { %v464_v41 = vpop.f32.mrf.mxu3 }
 0x157   : > { %v465_v43 = vadd.f32 %v464_v41, %v429_v40 }
 0x159   : > { %v470_v47 = vmax.f32 %v465_v43, 0.0 }
 0x15b   : > { %v472_v49 = vpack.c.bf16 %v470_v47, %v469_v46 }
 0x15d   : > { %485 = vmatpush.bf16.msra.mxu2 %v472_v49 }
 0x161   : > { %486 = vmatpush.bf16.msra.mxu2 %v471_v51 }
 0x164   : > { %598 = vmatmul.msk.bf16.vlgmr.msra.gmra.mxu2 %vm441_vm1, %v473_v52 }
 0x1e7   : > { %v488_v54 = vpop.f32.mrf.mxu2 }
 0x1e8   : > { %v489_v55 = vadd.f32 %v488_v54, %v475_v53 }
 0x1ea   : > { %492 = vst [vmem:[%s323_s30] sm:$0x1] %v489_v55 }
 0x1eb   : > { %678 = shalt.err (!%p675_p5)
}
 0x1ec   : > { %608 = dma.vmem_to_hbm [thread:$0]  (%p797_p6), %s505_s9, 16, %s507_s10, %s494_s14  }
 0x1ef   : > { %v490_v56 = vpop.f32.mrf.mxu2 }
 0x1f0 PF: > { %s518_s21 = sand.u32 1, %s701_s26   ;;  %p611_p7 = pnand %p569_p9, %p801_p8 }
 0x1f1   : > { %s519_s22 = scalar_lea.sflag [#allocation5], %s518_s21 }
 0x1f2   : > { %p612_p10 = pneg %p611_p7 }
 0x1f4   : > { %696 = dma.done.wait (%p612_p10), %s519_s22, 16  }
 0x1f5   : > { %698 = vsyncadd (%p612_p10), %s519_s22, 4294967280  ;;  %p18_p11 = scmp.ge.s32.totalorder %s782_s8, 4   ;;  %s906_s26 = smov %s705_s27 }
 0x1f6   : > { %s907_s27 = smov %s709_s28  ;;  %s908_s28 = smov %s795_s11 }
 0x1f7   : > { %s909_s29 = smov %s782_s8  ;;  %20 = sbr.rel (!%p18_p11) target bundleno = 5 (0x5), region = 129 }
 0x1fc   :  { %524 = vsyncpa [#allocation5], 1 }
 0x1fd   :  { %526 = vsyncpa [#allocation5 + $0x1], 1 }

</bundles_post_ra>
